<compile_context>
chip_gen: v5e
topology: v5e:2x2
jax: 0.10.0
libtpu: 0.0.40
codegen_flags: <defaults>
</compile_context>

<pallas_src>
import functools

import jax
import jax.numpy as jnp
from jax.experimental import pallas as pl
from jax.experimental.pallas import tpu as pltpu

_LANE = 128   # lane width (last dim)
_SUB = 8      # f32 sublane count (second-to-last dim)


def _round_up(n, m):
    return ((n + m - 1) // m) * m


def _pad2(a, rows, cols):
    r, c = a.shape
    if r == rows and c == cols:
        return a
    return jnp.pad(a, ((0, rows - r), (0, cols - c)))


def mlp_kernel(x_ref, w1_ref, b1_ref, w2_ref, b2_ref, w3_ref, b3_ref, o_ref):
    """Fused MLP on one batch tile; bias+ReLU run on the f32 accumulator."""
    x = x_ref[...]
    # Layer 1: Linear + ReLU
    h1 = jnp.dot(x, w1_ref[...], preferred_element_type=jnp.float32)
    h1 = jnp.maximum(h1 + b1_ref[...], 0.0)
    # Layer 2: Linear + ReLU
    h2 = jnp.dot(h1.astype(w2_ref.dtype), w2_ref[...],
                 preferred_element_type=jnp.float32)
    h2 = jnp.maximum(h2 + b2_ref[...], 0.0)
    # Layer 3: Linear (no activation)
    h3 = jnp.dot(h2.astype(w3_ref.dtype), w3_ref[...],
                 preferred_element_type=jnp.float32)
    o_ref[...] = (h3 + b3_ref[...]).astype(o_ref.dtype)
    # NOTE: for very wide hidden dims, tile the hidden (K/N) axes as extra grid
    # dims with a VMEM accumulator; unnecessary at these sizes.


@functools.partial(jax.jit, static_argnames=("block_batch",))
def mlp_forward(x, w1, b1, w2, b2, w3, b3, *, block_batch=256):
    """Full MLP forward in one Pallas call, tiled & pipelined over the batch."""
    batch, in_dim = x.shape
    hid1 = w1.shape[1]
    hid2 = w2.shape[1]
    out_dim = w3.shape[1]
    dtype_bytes = jnp.dtype(x.dtype).itemsize

    # Lane-pad every feature dim to a multiple of 128 (zero padding is exact:
    # padded weights/biases are zero, ReLU(0) = 0, so results are unchanged).
    in_p = _round_up(in_dim, _LANE)
    h1_p = _round_up(hid1, _LANE)
    h2_p = _round_up(hid2, _LANE)
    out_p = _round_up(out_dim, _LANE)

    # Batch tile: multiple of 8 sublanes (f32), capped at block_batch.
    tb = min(_round_up(block_batch, _SUB), _round_up(batch, _SUB))
    padded_b = _round_up(batch, tb)

    x_p = x
    if padded_b != batch or in_p != in_dim:
        x_p = jnp.pad(x, ((0, padded_b - batch), (0, in_p - in_dim)))
    w1_p = _pad2(w1, in_p, h1_p)
    b1_p = _pad2(b1, 1, h1_p)
    w2_p = _pad2(w2, h1_p, h2_p)
    b2_p = _pad2(b2, 1, h2_p)
    w3_p = _pad2(w3, h2_p, out_p)
    b3_p = _pad2(b3, 1, out_p)

    grid = (padded_b // tb,)

    # Resident VMEM footprint: double-buffered x/out tiles, weights/biases
    # (conservatively assume 2 buffers each), plus live f32 intermediates.
    vmem_bytes = dtype_bytes * (
        2 * tb * in_p
        + 2 * tb * out_p
        + 2 * (in_p * h1_p + h1_p * h2_p + h2_p * out_p)
        + 2 * (h1_p + h2_p + out_p)
    ) + 4 * tb * (h1_p + h2_p)
    vmem_limit = min(max(2 * vmem_bytes, 16 * 1024 * 1024), 64 * 1024 * 1024)

    out = pl.pallas_call(
        mlp_kernel,
        out_shape=jax.ShapeDtypeStruct((padded_b, out_p), x.dtype),
        grid_spec=pltpu.PrefetchScalarGridSpec(
            num_scalar_prefetch=0,
            grid=grid,
            in_specs=[
                pl.BlockSpec((tb, in_p), lambda i: (i, 0)),      # x: batch-tiled
                pl.BlockSpec((in_p, h1_p), lambda i: (0, 0)),    # w1 (resident)
                pl.BlockSpec((1, h1_p), lambda i: (0, 0)),       # b1
                pl.BlockSpec((h1_p, h2_p), lambda i: (0, 0)),    # w2 (resident)
                pl.BlockSpec((1, h2_p), lambda i: (0, 0)),       # b2
                pl.BlockSpec((h2_p, out_p), lambda i: (0, 0)),   # w3 (resident)
                pl.BlockSpec((1, out_p), lambda i: (0, 0)),      # b3
            ],
            out_specs=pl.BlockSpec((tb, out_p), lambda i: (i, 0)),
        ),
        compiler_params=pltpu.CompilerParams(
            dimension_semantics=("parallel",),
            vmem_limit_bytes=vmem_limit,
        ),
    )(x_p, w1_p, b1_p, w2_p, b2_p, w3_p, b3_p)

    return out[:batch, :out_dim]


def init_linear(key, fan_in, fan_out, dtype=jnp.float32):
    """Mimic PyTorch nn.Linear default init: U(-1/sqrt(fan_in), 1/sqrt(fan_in)).
    Weight returned pre-transposed as [fan_in, fan_out]; bias as [1, fan_out]."""
    kw, kb = jax.random.split(key)
    bound = 1.0 / jnp.sqrt(fan_in)
    w = jax.random.uniform(kw, (fan_in, fan_out), dtype, -bound, bound)
    b = jax.random.uniform(kb, (1, fan_out), dtype, -bound, bound)
    return w, b


if __name__ == "__main__":
    in_dim, hidden_dim, out_dim = 16, 32, 8
    batch = 48  # not a multiple of the batch tile -> exercises pad + slice path

    key = jax.random.PRNGKey(0)
    k_x, k1, k2, k3 = jax.random.split(key, 4)

    x = jax.random.normal(k_x, (batch, in_dim), jnp.float32)
    w1, b1 = init_linear(k1, in_dim, hidden_dim)
    w2, b2 = init_linear(k2, hidden_dim, hidden_dim)
    w3, b3 = init_linear(k3, hidden_dim, out_dim)

    # block_batch=32 forces a multi-step grid even at this small size, so the
    # batch-tiled / weight-resident pipeline path is actually exercised.
    out = mlp_forward(x, w1, b1, w2, b2, w3, b3, block_batch=32)
    out = jax.block_until_ready(out)

    # Pure-JAX reference check.
    ref = jnp.maximum(x @ w1 + b1, 0.0)
    ref = jnp.maximum(ref @ w2 + b2, 0.0)
    ref = ref @ w3 + b3
    assert out.shape == (batch, out_dim)
    assert jnp.allclose(out, ref, atol=1e-5, rtol=1e-5), "mismatch vs reference"

    print("KERNEL_OK")
</pallas_src>

<mosaic_0001>
module attributes {stable_mosaic.version = 11 : i64} {
  func.func @mlp_kernel(%arg0: i32, %arg1: memref<32x128xf32, #tpu.memory_space<vmem>>, %arg2: memref<128x128xf32, #tpu.memory_space<vmem>>, %arg3: memref<1x128xf32, #tpu.memory_space<vmem>>, %arg4: memref<128x128xf32, #tpu.memory_space<vmem>>, %arg5: memref<1x128xf32, #tpu.memory_space<vmem>>, %arg6: memref<128x128xf32, #tpu.memory_space<vmem>>, %arg7: memref<1x128xf32, #tpu.memory_space<vmem>>, %arg8: memref<32x128xf32, #tpu.memory_space<vmem>>) attributes {dimension_semantics = [#tpu.dimension_semantics<parallel>], iteration_bounds = array<i64: 2>, scalar_prefetch = 0 : i64, scratch_operands = 0 : i64, tpu.core_type = #tpu.core_type<tc>, window_params = [{transform_indices = @transform_0, window_bounds = array<i64: 32, 128>}, {pipeline_mode = #tpu.pipeline_mode<synchronous>, transform_indices = @transform_1, window_bounds = array<i64: 128, 128>}, {pipeline_mode = #tpu.pipeline_mode<synchronous>, transform_indices = @transform_2, window_bounds = array<i64: 1, 128>}, {pipeline_mode = #tpu.pipeline_mode<synchronous>, transform_indices = @transform_3, window_bounds = array<i64: 128, 128>}, {pipeline_mode = #tpu.pipeline_mode<synchronous>, transform_indices = @transform_4, window_bounds = array<i64: 1, 128>}, {pipeline_mode = #tpu.pipeline_mode<synchronous>, transform_indices = @transform_5, window_bounds = array<i64: 128, 128>}, {pipeline_mode = #tpu.pipeline_mode<synchronous>, transform_indices = @transform_6, window_bounds = array<i64: 1, 128>}, {transform_indices = @transform_7, window_bounds = array<i64: 32, 128>}]} {
    %c0 = arith.constant 0 : index
    %c0_0 = arith.constant 0 : index
    %0 = vector.load %arg1[%c0, %c0_0] : memref<32x128xf32, #tpu.memory_space<vmem>>, vector<32x128xf32>
    %c0_1 = arith.constant 0 : index
    %c0_2 = arith.constant 0 : index
    %1 = vector.load %arg2[%c0_1, %c0_2] : memref<128x128xf32, #tpu.memory_space<vmem>>, vector<128x128xf32>
    %cst = arith.constant dense<0.000000e+00> : vector<32x128xf32>
    %2 = tpu.matmul %0, %1, %cst {dimension_numbers = #tpu.dot_dimension_numbers<[1], [0], [0], [1], [0, 0, 1, 1], [], []>} : vector<32x128xf32>, vector<128x128xf32>, vector<32x128xf32> -> vector<32x128xf32>
    %c0_3 = arith.constant 0 : index
    %c0_4 = arith.constant 0 : index
    %3 = vector.load %arg3[%c0_3, %c0_4] : memref<1x128xf32, #tpu.memory_space<vmem>>, vector<1x128xf32>
    %4 = vector.broadcast %3 : vector<1x128xf32> to vector<32x128xf32>
    %5 = arith.addf %2, %4 : vector<32x128xf32>
    %cst_5 = arith.constant 0.000000e+00 : f32
    %6 = vector.broadcast %cst_5 : f32 to vector<32x128xf32>
    %7 = arith.maximumf %5, %6 : vector<32x128xf32>
    %c0_6 = arith.constant 0 : index
    %c0_7 = arith.constant 0 : index
    %8 = vector.load %arg4[%c0_6, %c0_7] : memref<128x128xf32, #tpu.memory_space<vmem>>, vector<128x128xf32>
    %cst_8 = arith.constant dense<0.000000e+00> : vector<32x128xf32>
    %9 = tpu.matmul %7, %8, %cst_8 {dimension_numbers = #tpu.dot_dimension_numbers<[1], [0], [0], [1], [0, 0, 1, 1], [], []>} : vector<32x128xf32>, vector<128x128xf32>, vector<32x128xf32> -> vector<32x128xf32>
    %c0_9 = arith.constant 0 : index
    %c0_10 = arith.constant 0 : index
    %10 = vector.load %arg5[%c0_9, %c0_10] : memref<1x128xf32, #tpu.memory_space<vmem>>, vector<1x128xf32>
    %11 = vector.broadcast %10 : vector<1x128xf32> to vector<32x128xf32>
    %12 = arith.addf %9, %11 : vector<32x128xf32>
    %cst_11 = arith.constant 0.000000e+00 : f32
    %13 = vector.broadcast %cst_11 : f32 to vector<32x128xf32>
    %14 = arith.maximumf %12, %13 : vector<32x128xf32>
    %c0_12 = arith.constant 0 : index
    %c0_13 = arith.constant 0 : index
    %15 = vector.load %arg6[%c0_12, %c0_13] : memref<128x128xf32, #tpu.memory_space<vmem>>, vector<128x128xf32>
    %cst_14 = arith.constant dense<0.000000e+00> : vector<32x128xf32>
    %16 = tpu.matmul %14, %15, %cst_14 {dimension_numbers = #tpu.dot_dimension_numbers<[1], [0], [0], [1], [0, 0, 1, 1], [], []>} : vector<32x128xf32>, vector<128x128xf32>, vector<32x128xf32> -> vector<32x128xf32>
    %c0_15 = arith.constant 0 : index
    %c0_16 = arith.constant 0 : index
    %17 = vector.load %arg7[%c0_15, %c0_16] : memref<1x128xf32, #tpu.memory_space<vmem>>, vector<1x128xf32>
    %18 = vector.broadcast %17 : vector<1x128xf32> to vector<32x128xf32>
    %19 = arith.addf %16, %18 : vector<32x128xf32>
    %c0_17 = arith.constant 0 : index
    %c0_18 = arith.constant 0 : index
    %20 = vector.load %arg8[%c0_17, %c0_18] : memref<32x128xf32, #tpu.memory_space<vmem>>, vector<32x128xf32>
    tpu.vector_store %arg8[%c0_17, %c0_18], %19 {strides = array<i32>} : memref<32x128xf32, #tpu.memory_space<vmem>>, vector<32x128xf32>,
    return
  }
  func.func @transform_0(%arg0: i32) -> (i32, i32) {
    %c0_i32 = arith.constant 0 : i32
    %c0_i32_0 = arith.constant 0 : i32
    return %arg0, %c0_i32 : i32, i32
  }
  func.func @transform_1(%arg0: i32) -> (i32, i32) {
    %c0_i32 = arith.constant 0 : i32
    %c0_i32_0 = arith.constant 0 : i32
    %c0_i32_1 = arith.constant 0 : i32
    return %c0_i32, %c0_i32_0 : i32, i32
  }
  func.func @transform_2(%arg0: i32) -> (i32, i32) {
    %c0_i32 = arith.constant 0 : i32
    %c0_i32_0 = arith.constant 0 : i32
    %c0_i32_1 = arith.constant 0 : i32
    return %c0_i32, %c0_i32_0 : i32, i32
  }
  func.func @transform_3(%arg0: i32) -> (i32, i32) {
    %c0_i32 = arith.constant 0 : i32
    %c0_i32_0 = arith.constant 0 : i32
    %c0_i32_1 = arith.constant 0 : i32
    return %c0_i32, %c0_i32_0 : i32, i32
  }
  func.func @transform_4(%arg0: i32) -> (i32, i32) {
    %c0_i32 = arith.constant 0 : i32
    %c0_i32_0 = arith.constant 0 : i32
    %c0_i32_1 = arith.constant 0 : i32
    return %c0_i32, %c0_i32_0 : i32, i32
  }
  func.func @transform_5(%arg0: i32) -> (i32, i32) {
    %c0_i32 = arith.constant 0 : i32
    %c0_i32_0 = arith.constant 0 : i32
    %c0_i32_1 = arith.constant 0 : i32
    return %c0_i32, %c0_i32_0 : i32, i32
  }
  func.func @transform_6(%arg0: i32) -> (i32, i32) {
    %c0_i32 = arith.constant 0 : i32
    %c0_i32_0 = arith.constant 0 : i32
    %c0_i32_1 = arith.constant 0 : i32
    return %c0_i32, %c0_i32_0 : i32, i32
  }
  func.func @transform_7(%arg0: i32) -> (i32, i32) {
    %c0_i32 = arith.constant 0 : i32
    %c0_i32_0 = arith.constant 0 : i32
    return %arg0, %c0_i32 : i32, i32
  }
}

</mosaic_0001>

<bundles_post_ra>
// kernel: mlp_forward.1
= control target key start
LH: loop header
LB: loop body
LE: loop exit
PB: predicated region body
PF: predicated region fallthrough
CT: control target
= control target key end

     0   :  { %s587_s24 = smov 0   ;;  %s764_s0 = inlined_call_operand.vmem [shape: f32[64,128], index: 0, kind: input, shape index: {}]   ;;  %s765_s1 = inlined_call_operand.vmem [shape: f32[128,128], index: 1, kind: input, shape index: {}]   ;;  %s766_s2 = inlined_call_operand.vmem [shape: f32[1,128], index: 2, kind: input, shape index: {}]   ;;  %s767_s3 = inlined_call_operand.vmem [shape: f32[128,128], index: 3, kind: input, shape index: {}]   ;;  %s768_s4 = inlined_call_operand.vmem [shape: f32[1,128], index: 4, kind: input, shape index: {}]   ;;  %s769_s5 = inlined_call_operand.vmem [shape: f32[128,128], index: 5, kind: input, shape index: {}]   ;;  %s770_s6 = inlined_call_operand.vmem [shape: f32[1,128], index: 6, kind: input, shape index: {}]   ;;  %s771_s7 = inlined_call_operand.vmem [shape: f32[64,128], index: 7, kind: output, shape index: {}]  }
   0x1 LB: > { %s501_s25 = sadd.s32 4294967295, %s545_s24   ;;  %p505_p0 = scmp.ge.s32.totalorder %s545_s24, 1  ;;  %s545_s24 = sphi %s587_s24, %s17_s24  }
   0x2   : > { %p238_p1 = scmp.lt.s32.totalorder %s545_s24, 3 }
   0x4   : > { %p239_p2 = pnand %p505_p0, %p238_p1 }
   0x5   : > { %s506_s19 = sshll.u32 (!%p239_p2), %s501_s25, 2 }
   0x6   : > { %242 = sbr.rel (%p239_p2) target bundleno = 462 (0x1ce), region = 48  ;;  %p271_p3 = scmp.lt.s32.totalorder (!%p239_p2), %s506_s19, 7 }
   0xb   : > { %v301_v0 = vld [vmem:[%s765_s1 + $0x78] sm:$0xff]  ;;  %v300_v1 = vld [vmem:[%s765_s1 + $0x70] sm:$0xff]  ;;  %v299_v2 = vld [vmem:[%s765_s1 + $0x68] sm:$0xff]  ;;  %s773_s19 = smov (!%p271_p3, %s506_s19), 7 }
   0xc   : > { %306 = vmatpush.msra.mxu0 %v301_v0  ;;  %512 = vmatpush.msra.mxu3 %v301_v0  ;;  %v298_v3 = vld [vmem:[%s765_s1 + $0x60] sm:$0xff]  ;;  %v297_v4 = vld [vmem:[%s765_s1 + $0x58] sm:$0xff]  ;;  %v296_v5 = vld [vmem:[%s765_s1 + $0x50] sm:$0xff]  ;;  %s507_s16 = sshll.u32 %s773_s19, 3 }
   0xd   : > { %v295_v6 = vld [vmem:[%s765_s1 + $0x48] sm:$0xff]  ;;  %v294_v7 = vld [vmem:[%s765_s1 + $0x40] sm:$0xff]  ;;  %v293_v8 = vld [vmem:[%s765_s1 + $0x38] sm:$0xff]  ;;  %s274_s29 = scalar_lea.vmem %s764_s0, %s507_s16  ;;  %s280_s10 = scalar_lea.vmem %s771_s7, %s507_s16 }
   0xe   : > { %307 = vmatpush.msra.mxu0 %v300_v1  ;;  %513 = vmatpush.msra.mxu3 %v300_v1  ;;  %v292_v9 = vld [vmem:[%s765_s1 + $0x30] sm:$0xff]  ;;  %v354_v10 = vld [vmem:[%s767_s3 + $0x78] sm:$0xff]  ;;  %v291_v12 = vld [vmem:[%s765_s1 + $0x28] sm:$0xff] }
   0xf   : > { %v353_v11 = vld [vmem:[%s767_s3 + $0x70] sm:$0xff]  ;;  %359 = vmatpush.msra.mxu1 %v354_v10  ;;  %v352_v13 = vld [vmem:[%s767_s3 + $0x68] sm:$0xff]  ;;  %v290_v14 = vld [vmem:[%s765_s1 + $0x20] sm:$0xff] }
  0x10   : > { %308 = vmatpush.msra.mxu0 %v299_v2  ;;  %514 = vmatpush.msra.mxu3 %v299_v2  ;;  %v351_v15 = vld [vmem:[%s767_s3 + $0x60] sm:$0xff]  ;;  %v289_v16 = vld [vmem:[%s765_s1 + $0x18] sm:$0xff]  ;;  %v288_v18 = vld [vmem:[%s765_s1 + $0x10] sm:$0xff] }
  0x11   : > { %360 = vmatpush.msra.mxu1 %v353_v11  ;;  %v350_v17 = vld [vmem:[%s767_s3 + $0x58] sm:$0xff]  ;;  %v349_v19 = vld [vmem:[%s767_s3 + $0x50] sm:$0xff]  ;;  %v287_v20 = vld [vmem:[%s765_s1 + $0x8] sm:$0xff] }
  0x12   : > { %309 = vmatpush.msra.mxu0 %v298_v3  ;;  %515 = vmatpush.msra.mxu3 %v298_v3  ;;  %v348_v21 = vld [vmem:[%s767_s3 + $0x48] sm:$0xff]  ;;  %v286_v22 = vld [vmem:[%s765_s1] sm:$0xff]  ;;  %v346_v26 = vld [vmem:[%s767_s3 + $0x38] sm:$0xff] }
  0x13   : > { %361 = vmatpush.msra.mxu1 %v352_v13  ;;  %v282_v23 = vld [vmem:[%s274_s29] sm:$0xff]  ;;  %v283_v24 = vld [vmem:[%s274_s29 + $0x8] sm:$0xff]  ;;  %v345_v27 = vld [vmem:[%s767_s3 + $0x30] sm:$0xff] }
  0x14   : > { %310 = vmatpush.msra.mxu0 %v297_v4  ;;  %516 = vmatpush.msra.mxu3 %v297_v4  ;;  %v347_v25 = vld [vmem:[%s767_s3 + $0x40] sm:$0xff]  ;;  %v344_v28 = vld [vmem:[%s767_s3 + $0x28] sm:$0xff]  ;;  %v284_v29 = vld [vmem:[%s274_s29 + $0x10] sm:$0xff] }
  0x15   : > { %362 = vmatpush.msra.mxu1 %v351_v15  ;;  %v343_v30 = vld [vmem:[%s767_s3 + $0x20] sm:$0xff]  ;;  %v342_v31 = vld [vmem:[%s767_s3 + $0x18] sm:$0xff]  ;;  %v341_v33 = vld [vmem:[%s767_s3 + $0x10] sm:$0xff] }
  0x16   : > { %311 = vmatpush.msra.mxu0 %v296_v5  ;;  %517 = vmatpush.msra.mxu3 %v296_v5  ;;  %v285_v32 = vld [vmem:[%s274_s29 + $0x18] sm:$0xff]  ;;  %v340_v34 = vld [vmem:[%s767_s3 + $0x8] sm:$0xff]  ;;  %v339_v35 = vld [vmem:[%s767_s3] sm:$0xff] }
  0x17   : > { %363 = vmatpush.msra.mxu1 %v350_v17  ;;  %v536_v36 = vld [vmem:[%s766_s2] ss:$0 sm:$0xff]  ;;  %v407_v37 = vld [vmem:[%s769_s5 + $0x78] sm:$0xff]  ;;  %v406_v38 = vld [vmem:[%s769_s5 + $0x70] sm:$0xff] }
  0x18   : > { %312 = vmatpush.msra.mxu0 %v295_v6  ;;  %518 = vmatpush.msra.mxu3 %v295_v6  ;;  %v405_v39 = vld [vmem:[%s769_s5 + $0x68] sm:$0xff]  ;;  %v404_v42 = vld [vmem:[%s769_s5 + $0x60] sm:$0xff]  ;;  %v403_v44 = vld [vmem:[%s769_s5 + $0x58] sm:$0xff] }
  0x19   : > { %364 = vmatpush.msra.mxu1 %v349_v19  ;;  %412 = vmatpush.msra.mxu2 %v407_v37  ;;  %v402_v45 = vld [vmem:[%s769_s5 + $0x50] sm:$0xff]  ;;  %v401_v48 = vld [vmem:[%s769_s5 + $0x48] sm:$0xff]  ;;  %v400_v50 = vld [vmem:[%s769_s5 + $0x40] sm:$0xff] }
  0x1a   : > { %313 = vmatpush.msra.mxu0 %v294_v7  ;;  %519 = vmatpush.msra.mxu3 %v294_v7  ;;  %v399_v51 = vld [vmem:[%s769_s5 + $0x38] sm:$0xff]  ;;  %v398_v52 = vld [vmem:[%s769_s5 + $0x30] sm:$0xff]  ;;  %v397_v55 = vld [vmem:[%s769_s5 + $0x28] sm:$0xff] }
  0x1b   : > { %365 = vmatpush.msra.mxu1 %v348_v21  ;;  %413 = vmatpush.msra.mxu2 %v406_v38  ;;  %v396_v57 = vld [vmem:[%s769_s5 + $0x20] sm:$0xff]  ;;  %v395_v58 = vld [vmem:[%s769_s5 + $0x18] sm:$0xff]  ;;  %v394_v62 = vld [vmem:[%s769_s5 + $0x10] sm:$0xff] }
  0x1c   : > { %314 = vmatpush.msra.mxu0 %v293_v8  ;;  %520 = vmatpush.msra.mxu3 %v293_v8  ;;  %v393_v63 = vld [vmem:[%s769_s5 + $0x8] sm:$0xff]  ;;  %v392_v0 = vld [vmem:[%s769_s5] sm:$0xff] }
  0x1d   : > { %366 = vmatpush.msra.mxu1 %v347_v25  ;;  %414 = vmatpush.msra.mxu2 %v405_v39  ;;  %v537_v1 = vld [vmem:[%s768_s4] ss:$0 sm:$0xff] }
  0x1e   : > { %315 = vmatpush.msra.mxu0 %v292_v9  ;;  %521 = vmatpush.msra.mxu3 %v292_v9 }
  0x1f   : > { %367 = vmatpush.msra.mxu1 %v346_v26  ;;  %415 = vmatpush.msra.mxu2 %v404_v42 }
  0x20   : > { %316 = vmatpush.msra.mxu0 %v291_v12  ;;  %522 = vmatpush.msra.mxu3 %v291_v12 }
  0x21   : > { %368 = vmatpush.msra.mxu1 %v345_v27  ;;  %416 = vmatpush.msra.mxu2 %v403_v44 }
  0x22   : > { %317 = vmatpush.msra.mxu0 %v290_v14  ;;  %523 = vmatpush.msra.mxu3 %v290_v14  ;;  %v538_v14 = vld [vmem:[%s770_s6] ss:$0 sm:$0xff] }
  0x23   : > { %369 = vmatpush.msra.mxu1 %v344_v28  ;;  %417 = vmatpush.msra.mxu2 %v402_v45 }
  0x24   : > { %318 = vmatpush.msra.mxu0 %v289_v16  ;;  %524 = vmatpush.msra.mxu3 %v289_v16 }
  0x25   : > { %370 = vmatpush.msra.mxu1 %v343_v30  ;;  %418 = vmatpush.msra.mxu2 %v401_v48 }
  0x26   : > { %319 = vmatpush.msra.mxu0 %v288_v18  ;;  %525 = vmatpush.msra.mxu3 %v288_v18 }
  0x27   : > { %371 = vmatpush.msra.mxu1 %v342_v31  ;;  %419 = vmatpush.msra.mxu2 %v400_v50 }
  0x28   : > { %320 = vmatpush.msra.mxu0 %v287_v20  ;;  %526 = vmatpush.msra.mxu3 %v287_v20 }
  0x29   : > { %372 = vmatpush.msra.mxu1 %v341_v33  ;;  %420 = vmatpush.msra.mxu2 %v399_v51 }
  0x2a   : > { %321 = vmatpush.msra.mxu0 %v286_v22  ;;  %527 = vmatpush.msra.mxu3 %v286_v22 }
  0x2b   : > { %322 = vmatmul.f32.vlgmr.msra.gmra.mxu0 %v282_v23  ;;  %325 = vmatmul.f32.vlgmr.msra.gmra.mxu3 %v283_v24 }
  0x2c   : > { %373 = vmatpush.msra.mxu1 %v340_v34  ;;  %421 = vmatpush.msra.mxu2 %v398_v52 }
  0x2e   : > { %374 = vmatpush.msra.mxu1 %v339_v35  ;;  %422 = vmatpush.msra.mxu2 %v397_v55 }
  0x30   : > { %423 = vmatpush.msra.mxu2 %v396_v57 }
  0x32   : > { %424 = vmatpush.msra.mxu2 %v395_v58 }
  0x33   : > { %328 = vmatmul.f32.gmra.mxu3 %v284_v29 }
  0x34   : > { %425 = vmatpush.msra.mxu2 %v394_v62 }
  0x36   : > { %426 = vmatpush.msra.mxu2 %v393_v63 }
  0x38   : > { %427 = vmatpush.msra.mxu2 %v392_v0 }
  0x3b   : > { %331 = vmatmul.f32.gmra.mxu3 %v285_v32 }
  0xa8   : > { %v323_v40 = vpop.f32.mrf.mxu0 }
  0xa9   : > { %v324_v41 = vadd.f32 %v536_v36, %v323_v40 }
  0xab   : > { %v335_v43 = vmax.f32 %v324_v41, 0.0 }
  0xad   : > { %375 = vmatmul.f32.vlgmr.msra.gmra.mxu1 %v335_v43 }
  0xae   : > { %v326_v46 = vpop.f32.mrf.mxu3 }
  0xaf   : > { %v327_v47 = vadd.f32 %v536_v36, %v326_v46 }
  0xb1   : > { %v336_v49 = vmax.f32 %v327_v47, 0.0 }
  0xb5   : > { %378 = vmatmul.f32.gmra.mxu1 %v336_v49 }
  0xb6   : > { %v329_v53 = vpop.f32.mrf.mxu3 }
  0xb7   : > { %v330_v54 = vadd.f32 %v536_v36, %v329_v53 }
  0xb9   : > { %v337_v56 = vmax.f32 %v330_v54, 0.0 }
  0xbd   : > { %381 = vmatmul.f32.gmra.mxu1 %v337_v56 }
  0xbe   : > { %v332_v59 = vpop.f32.mrf.mxu3 }
  0xbf   : > { %v333_v60 = vadd.f32 %v536_v36, %v332_v59 }
  0xc1   : > { %v338_v61 = vmax.f32 %v333_v60, 0.0 }
  0xc5   : > { %384 = vmatmul.f32.gmra.mxu1 %v338_v61 }
 0x12a   : > { %v376_v2 = vpop.f32.mrf.mxu1 }
 0x12b   : > { %v377_v3 = vadd.f32 %v537_v1, %v376_v2 }
 0x12d   : > { %v388_v4 = vmax.f32 %v377_v3, 0.0 }
 0x12f   : > { %428 = vmatmul.f32.vlgmr.msra.gmra.mxu2 %v388_v4 }
 0x132   : > { %v379_v5 = vpop.f32.mrf.mxu1 }
 0x133   : > { %v380_v6 = vadd.f32 %v537_v1, %v379_v5 }
 0x135   : > { %v389_v7 = vmax.f32 %v380_v6, 0.0 }
 0x137   : > { %431 = vmatmul.f32.gmra.mxu2 %v389_v7 }
 0x13a   : > { %v382_v8 = vpop.f32.mrf.mxu1 }
 0x13b   : > { %v383_v9 = vadd.f32 %v537_v1, %v382_v8 }
 0x13d   : > { %v390_v10 = vmax.f32 %v383_v9, 0.0 }
 0x13f   : > { %434 = vmatmul.f32.gmra.mxu2 %v390_v10 }
 0x142   : > { %v385_v11 = vpop.f32.mrf.mxu1 }
 0x143   : > { %v386_v12 = vadd.f32 %v537_v1, %v385_v11 }
 0x145   : > { %v391_v13 = vmax.f32 %v386_v12, 0.0 }
 0x147   : > { %437 = vmatmul.f32.gmra.mxu2 %v391_v13 }
 0x1b2   : > { %v429_v15 = vpop.f32.mrf.mxu2 }
 0x1b3   : > { %v430_v16 = vadd.f32 %v538_v14, %v429_v15 }
 0x1b5   : > { %441 = vst [vmem:[%s280_s10] sm:$0xff] %v430_v16 }
 0x1ba   : > { %v432_v17 = vpop.f32.mrf.mxu2 }
 0x1bb   : > { %v433_v18 = vadd.f32 %v538_v14, %v432_v17 }
 0x1bd   : > { %442 = vst [vmem:[%s280_s10 + $0x8] sm:$0xff] %v433_v18 }
 0x1c2   : > { %v435_v19 = vpop.f32.mrf.mxu2 }
 0x1c3   : > { %v436_v20 = vadd.f32 %v538_v14, %v435_v19 }
 0x1c5   : > { %443 = vst [vmem:[%s280_s10 + $0x10] sm:$0xff] %v436_v20 }
 0x1ca   : > { %v438_v21 = vpop.f32.mrf.mxu2 }
 0x1cb   : > { %v439_v22 = vadd.f32 %v538_v14, %v438_v21 }
 0x1cd   : > { %444 = vst [vmem:[%s280_s10 + $0x18] sm:$0xff] %v439_v22 }
 0x1ce PF: > { %s17_s24 = sadd.s32 1, %s545_s24  }
 0x1cf   : > { %p14_p4 = scmp.ge.s32.totalorder %s17_s24, 4  }
 0x1d1   :  { %16 = sbr.rel (!%p14_p4) target bundleno = 1 (0x1), region = 78 }

</bundles_post_ra>
